<compile_context>
chip_gen: v5e
topology: v5e:2x2
jax: 0.10.0
libtpu: 0.0.40
codegen_flags: <defaults>
</compile_context>

<pallas_src>
import jax
import jax.numpy as jnp
from jax.experimental import pallas as pl
from jax.experimental.pallas import tpu as pltpu


def postprocess_kernel(hs_ref, w1_ref, b1_ref, w2_ref, b2_ref,
                       gamma_ref, beta_ref, out_ref):
    hs_f32 = hs_ref[...].astype(jnp.float32)          # (tm, D) residual path, f32
    mm_dtype = w1_ref.dtype                           # bf16 matmul operand dtype

    # Intermediate dense + ReLU  (bf16 MXU inputs, f32 accumulation).
    h = jnp.dot(hs_ref[...].astype(mm_dtype), w1_ref[...],
                preferred_element_type=jnp.float32)
    h = jnp.maximum(h + b1_ref[...], 0.0)             # (tm, D), f32

    # Output dense + residual (dropout is identity in eval mode).
    y = jnp.dot(h.astype(mm_dtype), w2_ref[...],
                preferred_element_type=jnp.float32)
    y = y + b2_ref[...] + hs_f32                      # (tm, D), f32

    # LayerNorm over last dim, eps = 1e-5 — one-pass statistics (E[y], E[y^2]).
    inv_d = 1.0 / y.shape[-1]
    mean = jnp.sum(y, axis=-1, keepdims=True) * inv_d
    mean_sq = jnp.sum(y * y, axis=-1, keepdims=True) * inv_d
    var = mean_sq - mean * mean
    inv_std = jax.lax.rsqrt(var + 1e-5)
    out_ref[...] = ((y - mean) * inv_std * gamma_ref[...]
                    + beta_ref[...]).astype(out_ref.dtype)


def _resident_spec(shape, single_buffer):
    # Params with a constant index_map stay resident in VMEM for the whole grid.
    if single_buffer:
        return pl.BlockSpec(shape, lambda i: (0, 0), pipeline_mode=pl.Buffered(1))
    return pl.BlockSpec(shape, lambda i: (0, 0))


def _build_call(rows_p, D, tm, out_dtype, mm_itemsize, single_buffer_weights,
                vmem_limit_bytes):
    in_specs = [
        pl.BlockSpec((tm, D), lambda i: (i, 0)),                 # HS row tile
        _resident_spec((D, D), single_buffer_weights),           # W1
        _resident_spec((1, D), single_buffer_weights),           # b1
        _resident_spec((D, D), single_buffer_weights),           # W2
        _resident_spec((1, D), single_buffer_weights),           # b2
        _resident_spec((1, D), single_buffer_weights),           # gamma
        _resident_spec((1, D), single_buffer_weights),           # beta
    ]
    cost = pl.CostEstimate(
        flops=4 * rows_p * D * D,                  # two D x D matmuls
        transcendentals=rows_p,                    # one rsqrt per row
        bytes_accessed=(2 * rows_p * D * 4         # HS in + out (f32)
                        + 2 * D * D * mm_itemsize  # W1 + W2 (bf16)
                        + 4 * D * 4),              # b1, b2, gamma, beta
    )
    return pl.pallas_call(
        postprocess_kernel,
        out_shape=jax.ShapeDtypeStruct((rows_p, D), out_dtype),
        grid_spec=pltpu.PrefetchScalarGridSpec(
            num_scalar_prefetch=0,
            grid=(rows_p // tm,),
            in_specs=in_specs,
            out_specs=pl.BlockSpec((tm, D), lambda i: (i, 0)),
        ),
        compiler_params=pltpu.CompilerParams(
            dimension_semantics=("parallel",),
            vmem_limit_bytes=vmem_limit_bytes,
        ),
        cost_estimate=cost,
    )


def postprocess(hs, w1, b1, w2, b2, gamma, beta, *, tm=256,
                compute_dtype=jnp.bfloat16,
                vmem_limit_bytes=64 * 1024 * 1024):
    """hs: (B, S, D).  w1/w2: (D, D) pre-transposed so the kernel does x @ W."""
    B, S, D = hs.shape
    rows = B * S
    assert D % 128 == 0, "hidden size must be a multiple of 128 (lane axis)"

    # Row tile: fill the MXU / amortize step overhead, clamp to problem size,
    # keep it a multiple of 8 (sublane), and prefer >=2 grid steps (v7x megacore).
    tm = max(8, min(tm, rows))
    tm -= tm % 8
    if rows // tm < 2 and rows >= 16:
        tm = max(8, (rows // 2) // 8 * 8)
    rows_p = pl.cdiv(rows, tm) * tm

    hs2 = hs.reshape(rows, D).astype(jnp.float32)
    if rows_p != rows:
        hs2 = jnp.pad(hs2, ((0, rows_p - rows), (0, 0)))

    # bf16 matmul operands (f32 accumulation in-kernel); bias / LN params in f32.
    w1c = w1.astype(compute_dtype)
    w2c = w2.astype(compute_dtype)
    b1_2 = b1.reshape(1, D).astype(jnp.float32)
    b2_2 = b2.reshape(1, D).astype(jnp.float32)
    g_2 = gamma.reshape(1, D).astype(jnp.float32)
    be_2 = beta.reshape(1, D).astype(jnp.float32)

    mm_itemsize = jnp.dtype(compute_dtype).itemsize
    args = (hs2, w1c, b1_2, w2c, b2_2, g_2, be_2)
    try:
        out = _build_call(rows_p, D, tm, hs.dtype, mm_itemsize,
                          True, vmem_limit_bytes)(*args)
    except Exception:
        # Fallback if this Pallas build rejects BlockSpec(pipeline_mode=Buffered(1)).
        out = _build_call(rows_p, D, tm, hs.dtype, mm_itemsize,
                          False, vmem_limit_bytes)(*args)

    return out[:rows].reshape(B, S, D)


def postprocess_ref(hs, w1, b1, w2, b2, gamma, beta):
    h = jnp.maximum(hs @ w1 + b1, 0.0)
    y = h @ w2 + b2 + hs
    mean = jnp.mean(y, axis=-1, keepdims=True)
    var = jnp.mean(jnp.square(y - mean), axis=-1, keepdims=True)
    return (y - mean) * jax.lax.rsqrt(var + 1e-5) * gamma + beta


if __name__ == "__main__":
    B, S, D = 2, 8, 128   # D is a multiple of 128 (lane axis)
    key = jax.random.PRNGKey(0)
    k_hs, k_w1, k_b1, k_w2, k_b2 = jax.random.split(key, 5)

    hs = jax.random.normal(k_hs, (B, S, D), dtype=jnp.float32)
    # nn.Linear(D, D) params; stored pre-transposed so the kernel does x @ W.
    scale = 1.0 / (D ** 0.5)
    w1 = jax.random.uniform(k_w1, (D, D), jnp.float32, -scale, scale)
    b1 = jax.random.uniform(k_b1, (D,), jnp.float32, -scale, scale)
    w2 = jax.random.uniform(k_w2, (D, D), jnp.float32, -scale, scale)
    b2 = jax.random.uniform(k_b2, (D,), jnp.float32, -scale, scale)
    # LayerNorm affine params (torch default init: gamma=1, beta=0)
    gamma = jnp.ones((D,), jnp.float32)
    beta = jnp.zeros((D,), jnp.float32)

    out = postprocess(hs, w1, b1, w2, b2, gamma, beta)
    out = jax.block_until_ready(out)

    ref = postprocess_ref(hs, w1, b1, w2, b2, gamma, beta)
    assert out.shape == (B, S, D)
    # Tolerance accounts for bf16 matmul inputs (f32 accumulation, f32 residual/LN).
    assert jnp.allclose(out, ref, atol=3e-2, rtol=3e-2), "mismatch vs reference"
    # TODO(synk): dropout is treated as identity (eval mode); training-mode
    # stochastic dropout would need pltpu.prng_* inside the kernel.
    print("KERNEL_OK")
</pallas_src>

<mosaic_0001>
module attributes {stable_mosaic.version = 11 : i64} {
  func.func @postprocess_kernel(%arg0: i32, %arg1: memref<8x128xf32, #tpu.memory_space<vmem>>, %arg2: memref<128x128xbf16, #tpu.memory_space<vmem>>, %arg3: memref<1x128xf32, #tpu.memory_space<vmem>>, %arg4: memref<128x128xbf16, #tpu.memory_space<vmem>>, %arg5: memref<1x128xf32, #tpu.memory_space<vmem>>, %arg6: memref<1x128xf32, #tpu.memory_space<vmem>>, %arg7: memref<1x128xf32, #tpu.memory_space<vmem>>, %arg8: memref<8x128xf32, #tpu.memory_space<vmem>>) attributes {dimension_semantics = [#tpu.dimension_semantics<parallel>], iteration_bounds = array<i64: 2>, scalar_prefetch = 0 : i64, scratch_operands = 0 : i64, tpu.core_type = #tpu.core_type<tc>, window_params = [{transform_indices = @transform_0, window_bounds = array<i64: 8, 128>}, {pipeline_mode = #tpu.pipeline_mode<synchronous>, transform_indices = @transform_1, window_bounds = array<i64: 128, 128>}, {pipeline_mode = #tpu.pipeline_mode<synchronous>, transform_indices = @transform_2, window_bounds = array<i64: 1, 128>}, {pipeline_mode = #tpu.pipeline_mode<synchronous>, transform_indices = @transform_3, window_bounds = array<i64: 128, 128>}, {pipeline_mode = #tpu.pipeline_mode<synchronous>, transform_indices = @transform_4, window_bounds = array<i64: 1, 128>}, {pipeline_mode = #tpu.pipeline_mode<synchronous>, transform_indices = @transform_5, window_bounds = array<i64: 1, 128>}, {pipeline_mode = #tpu.pipeline_mode<synchronous>, transform_indices = @transform_6, window_bounds = array<i64: 1, 128>}, {transform_indices = @transform_7, window_bounds = array<i64: 8, 128>}]} {
    %c0 = arith.constant 0 : index
    %c0_0 = arith.constant 0 : index
    %0 = vector.load %arg1[%c0, %c0_0] : memref<8x128xf32, #tpu.memory_space<vmem>>, vector<8x128xf32>
    %c0_1 = arith.constant 0 : index
    %c0_2 = arith.constant 0 : index
    %1 = vector.load %arg1[%c0_1, %c0_2] : memref<8x128xf32, #tpu.memory_space<vmem>>, vector<8x128xf32>
    %2 = arith.truncf %1 : vector<8x128xf32> to vector<8x128xbf16>
    %c0_3 = arith.constant 0 : index
    %c0_4 = arith.constant 0 : index
    %3 = vector.load %arg2[%c0_3, %c0_4] : memref<128x128xbf16, #tpu.memory_space<vmem>>, vector<128x128xbf16>
    %cst = arith.constant dense<0.000000e+00> : vector<8x128xf32>
    %4 = tpu.matmul %2, %3, %cst {dimension_numbers = #tpu.dot_dimension_numbers<[1], [0], [0], [1], [0, 0, 1, 1], [], []>} : vector<8x128xbf16>, vector<128x128xbf16>, vector<8x128xf32> -> vector<8x128xf32>
    %c0_5 = arith.constant 0 : index
    %c0_6 = arith.constant 0 : index
    %5 = vector.load %arg3[%c0_5, %c0_6] : memref<1x128xf32, #tpu.memory_space<vmem>>, vector<1x128xf32>
    %6 = vector.broadcast %5 : vector<1x128xf32> to vector<8x128xf32>
    %7 = arith.addf %4, %6 : vector<8x128xf32>
    %cst_7 = arith.constant 0.000000e+00 : f32
    %8 = vector.broadcast %cst_7 : f32 to vector<8x128xf32>
    %9 = arith.maximumf %7, %8 : vector<8x128xf32>
    %10 = arith.truncf %9 : vector<8x128xf32> to vector<8x128xbf16>
    %c0_8 = arith.constant 0 : index
    %c0_9 = arith.constant 0 : index
    %11 = vector.load %arg4[%c0_8, %c0_9] : memref<128x128xbf16, #tpu.memory_space<vmem>>, vector<128x128xbf16>
    %cst_10 = arith.constant dense<0.000000e+00> : vector<8x128xf32>
    %12 = tpu.matmul %10, %11, %cst_10 {dimension_numbers = #tpu.dot_dimension_numbers<[1], [0], [0], [1], [0, 0, 1, 1], [], []>} : vector<8x128xbf16>, vector<128x128xbf16>, vector<8x128xf32> -> vector<8x128xf32>
    %c0_11 = arith.constant 0 : index
    %c0_12 = arith.constant 0 : index
    %13 = vector.load %arg5[%c0_11, %c0_12] : memref<1x128xf32, #tpu.memory_space<vmem>>, vector<1x128xf32>
    %14 = vector.broadcast %13 : vector<1x128xf32> to vector<8x128xf32>
    %15 = arith.addf %12, %14 : vector<8x128xf32>
    %16 = arith.addf %15, %0 : vector<8x128xf32>
    %cst_13 = arith.constant dense<0.000000e+00> : vector<8xf32>
    %17 = vector.multi_reduction <add>, %16, %cst_13 [1] : vector<8x128xf32> to vector<8xf32>
    %18 = vector.shape_cast %17 : vector<8xf32> to vector<8x1xf32>
    %cst_14 = arith.constant 7.812500e-03 : f32
    %19 = vector.broadcast %cst_14 : f32 to vector<8x1xf32>
    %20 = arith.mulf %18, %19 : vector<8x1xf32>
    %21 = arith.mulf %16, %16 : vector<8x128xf32>
    %cst_15 = arith.constant dense<0.000000e+00> : vector<8xf32>
    %22 = vector.multi_reduction <add>, %21, %cst_15 [1] : vector<8x128xf32> to vector<8xf32>
    %23 = vector.shape_cast %22 : vector<8xf32> to vector<8x1xf32>
    %cst_16 = arith.constant 7.812500e-03 : f32
    %24 = vector.broadcast %cst_16 : f32 to vector<8x1xf32>
    %25 = arith.mulf %23, %24 : vector<8x1xf32>
    %26 = arith.mulf %20, %20 : vector<8x1xf32>
    %27 = arith.subf %25, %26 : vector<8x1xf32>
    %cst_17 = arith.constant 9.99999974E-6 : f32
    %28 = vector.broadcast %cst_17 : f32 to vector<8x1xf32>
    %29 = arith.addf %27, %28 : vector<8x1xf32>
    %30 = math.rsqrt %29 : vector<8x1xf32>
    %31 = vector.broadcast %20 : vector<8x1xf32> to vector<8x128xf32>
    %32 = arith.subf %16, %31 : vector<8x128xf32>
    %33 = vector.broadcast %30 : vector<8x1xf32> to vector<8x128xf32>
    %34 = arith.mulf %32, %33 : vector<8x128xf32>
    %c0_18 = arith.constant 0 : index
    %c0_19 = arith.constant 0 : index
    %35 = vector.load %arg6[%c0_18, %c0_19] : memref<1x128xf32, #tpu.memory_space<vmem>>, vector<1x128xf32>
    %36 = vector.broadcast %35 : vector<1x128xf32> to vector<8x128xf32>
    %37 = arith.mulf %34, %36 : vector<8x128xf32>
    %c0_20 = arith.constant 0 : index
    %c0_21 = arith.constant 0 : index
    %38 = vector.load %arg7[%c0_20, %c0_21] : memref<1x128xf32, #tpu.memory_space<vmem>>, vector<1x128xf32>
    %39 = vector.broadcast %38 : vector<1x128xf32> to vector<8x128xf32>
    %40 = arith.addf %37, %39 : vector<8x128xf32>
    %c0_22 = arith.constant 0 : index
    %c0_23 = arith.constant 0 : index
    %41 = vector.load %arg8[%c0_22, %c0_23] : memref<8x128xf32, #tpu.memory_space<vmem>>, vector<8x128xf32>
    tpu.vector_store %arg8[%c0_22, %c0_23], %40 {strides = array<i32>} : memref<8x128xf32, #tpu.memory_space<vmem>>, vector<8x128xf32>,
    return
  }
  func.func @transform_0(%arg0: i32) -> (i32, i32) {
    %c0_i32 = arith.constant 0 : i32
    %c0_i32_0 = arith.constant 0 : i32
    return %arg0, %c0_i32 : i32, i32
  }
  func.func @transform_1(%arg0: i32) -> (i32, i32) {
    %c0_i32 = arith.constant 0 : i32
    %c0_i32_0 = arith.constant 0 : i32
    %c0_i32_1 = arith.constant 0 : i32
    return %c0_i32, %c0_i32_0 : i32, i32
  }
  func.func @transform_2(%arg0: i32) -> (i32, i32) {
    %c0_i32 = arith.constant 0 : i32
    %c0_i32_0 = arith.constant 0 : i32
    %c0_i32_1 = arith.constant 0 : i32
    return %c0_i32, %c0_i32_0 : i32, i32
  }
  func.func @transform_3(%arg0: i32) -> (i32, i32) {
    %c0_i32 = arith.constant 0 : i32
    %c0_i32_0 = arith.constant 0 : i32
    %c0_i32_1 = arith.constant 0 : i32
    return %c0_i32, %c0_i32_0 : i32, i32
  }
  func.func @transform_4(%arg0: i32) -> (i32, i32) {
    %c0_i32 = arith.constant 0 : i32
    %c0_i32_0 = arith.constant 0 : i32
    %c0_i32_1 = arith.constant 0 : i32
    return %c0_i32, %c0_i32_0 : i32, i32
  }
  func.func @transform_5(%arg0: i32) -> (i32, i32) {
    %c0_i32 = arith.constant 0 : i32
    %c0_i32_0 = arith.constant 0 : i32
    %c0_i32_1 = arith.constant 0 : i32
    return %c0_i32, %c0_i32_0 : i32, i32
  }
  func.func @transform_6(%arg0: i32) -> (i32, i32) {
    %c0_i32 = arith.constant 0 : i32
    %c0_i32_0 = arith.constant 0 : i32
    %c0_i32_1 = arith.constant 0 : i32
    return %c0_i32, %c0_i32_0 : i32, i32
  }
  func.func @transform_7(%arg0: i32) -> (i32, i32) {
    %c0_i32 = arith.constant 0 : i32
    %c0_i32_0 = arith.constant 0 : i32
    return %arg0, %c0_i32 : i32, i32
  }
}

module attributes {stable_mosaic.version = 11 : i64} {
  func.func @postprocess_kernel(%arg0: i32, %arg1: memref<8x128xf32, #tpu.memory_space<vmem>>, %arg2: memref<128x128xbf16, #tpu.memory_space<vmem>>, %arg3: memref<1x128xf32, #tpu.memory_space<vmem>>, %arg4: memref<128x128xbf16, #tpu.memory_space<vmem>>, %arg5: memref<1x128xf32, #tpu.memory_space<vmem>>, %arg6: memref<1x128xf32, #tpu.memory_space<vmem>>, %arg7: memref<1x128xf32, #tpu.memory_space<vmem>>, %arg8: memref<8x128xf32, #tpu.memory_space<vmem>>) attributes {dimension_semantics = [#tpu.dimension_semantics<parallel>], iteration_bounds = array<i64: 2>, scalar_prefetch = 0 : i64, scratch_operands = 0 : i64, tpu.core_type = #tpu.core_type<tc>, window_params = [{transform_indices = @transform_0, window_bounds = array<i64: 8, 128>}, {pipeline_mode = #tpu.pipeline_mode<synchronous>, transform_indices = @transform_1, window_bounds = array<i64: 128, 128>}, {pipeline_mode = #tpu.pipeline_mode<synchronous>, transform_indices = @transform_2, window_bounds = array<i64: 1, 128>}, {pipeline_mode = #tpu.pipeline_mode<synchronous>, transform_indices = @transform_3, window_bounds = array<i64: 128, 128>}, {pipeline_mode = #tpu.pipeline_mode<synchronous>, transform_indices = @transform_4, window_bounds = array<i64: 1, 128>}, {pipeline_mode = #tpu.pipeline_mode<synchronous>, transform_indices = @transform_5, window_bounds = array<i64: 1, 128>}, {pipeline_mode = #tpu.pipeline_mode<synchronous>, transform_indices = @transform_6, window_bounds = array<i64: 1, 128>}, {transform_indices = @transform_7, window_bounds = array<i64: 8, 128>}]} {
    %c0 = arith.constant 0 : index
    %c0_0 = arith.constant 0 : index
    %0 = vector.load %arg1[%c0, %c0_0] : memref<8x128xf32, #tpu.memory_space<vmem>>, vector<8x128xf32>
    %c0_1 = arith.constant 0 : index
    %c0_2 = arith.constant 0 : index
    %1 = vector.load %arg1[%c0_1, %c0_2] : memref<8x128xf32, #tpu.memory_space<vmem>>, vector<8x128xf32>
    %2 = arith.truncf %1 : vector<8x128xf32> to vector<8x128xbf16>
    %c0_3 = arith.constant 0 : index
    %c0_4 = arith.constant 0 : index
    %3 = vector.load %arg2[%c0_3, %c0_4] : memref<128x128xbf16, #tpu.memory_space<vmem>>, vector<128x128xbf16>
    %cst = arith.constant dense<0.000000e+00> : vector<8x128xf32>
    %4 = tpu.matmul %2, %3, %cst {dimension_numbers = #tpu.dot_dimension_numbers<[1], [0], [0], [1], [0, 0, 1, 1], [], []>} : vector<8x128xbf16>, vector<128x128xbf16>, vector<8x128xf32> -> vector<8x128xf32>
    %c0_5 = arith.constant 0 : index
    %c0_6 = arith.constant 0 : index
    %5 = vector.load %arg3[%c0_5, %c0_6] : memref<1x128xf32, #tpu.memory_space<vmem>>, vector<1x128xf32>
    %6 = vector.broadcast %5 : vector<1x128xf32> to vector<8x128xf32>
    %7 = arith.addf %4, %6 : vector<8x128xf32>
    %cst_7 = arith.constant 0.000000e+00 : f32
    %8 = vector.broadcast %cst_7 : f32 to vector<8x128xf32>
    %9 = arith.maximumf %7, %8 : vector<8x128xf32>
    %10 = arith.truncf %9 : vector<8x128xf32> to vector<8x128xbf16>
    %c0_8 = arith.constant 0 : index
    %c0_9 = arith.constant 0 : index
    %11 = vector.load %arg4[%c0_8, %c0_9] : memref<128x128xbf16, #tpu.memory_space<vmem>>, vector<128x128xbf16>
    %cst_10 = arith.constant dense<0.000000e+00> : vector<8x128xf32>
    %12 = tpu.matmul %10, %11, %cst_10 {dimension_numbers = #tpu.dot_dimension_numbers<[1], [0], [0], [1], [0, 0, 1, 1], [], []>} : vector<8x128xbf16>, vector<128x128xbf16>, vector<8x128xf32> -> vector<8x128xf32>
    %c0_11 = arith.constant 0 : index
    %c0_12 = arith.constant 0 : index
    %13 = vector.load %arg5[%c0_11, %c0_12] : memref<1x128xf32, #tpu.memory_space<vmem>>, vector<1x128xf32>
    %14 = vector.broadcast %13 : vector<1x128xf32> to vector<8x128xf32>
    %15 = arith.addf %12, %14 : vector<8x128xf32>
    %16 = arith.addf %15, %0 : vector<8x128xf32>
    %cst_13 = arith.constant dense<0.000000e+00> : vector<8xf32>
    %17 = vector.multi_reduction <add>, %16, %cst_13 [1] : vector<8x128xf32> to vector<8xf32>
    %18 = vector.shape_cast %17 : vector<8xf32> to vector<8x1xf32>
    %cst_14 = arith.constant 7.812500e-03 : f32
    %19 = vector.broadcast %cst_14 : f32 to vector<8x1xf32>
    %20 = arith.mulf %18, %19 : vector<8x1xf32>
    %21 = arith.mulf %16, %16 : vector<8x128xf32>
    %cst_15 = arith.constant dense<0.000000e+00> : vector<8xf32>
    %22 = vector.multi_reduction <add>, %21, %cst_15 [1] : vector<8x128xf32> to vector<8xf32>
    %23 = vector.shape_cast %22 : vector<8xf32> to vector<8x1xf32>
    %cst_16 = arith.constant 7.812500e-03 : f32
    %24 = vector.broadcast %cst_16 : f32 to vector<8x1xf32>
    %25 = arith.mulf %23, %24 : vector<8x1xf32>
    %26 = arith.mulf %20, %20 : vector<8x1xf32>
    %27 = arith.subf %25, %26 : vector<8x1xf32>
    %cst_17 = arith.constant 9.99999974E-6 : f32
    %28 = vector.broadcast %cst_17 : f32 to vector<8x1xf32>
    %29 = arith.addf %27, %28 : vector<8x1xf32>
    %30 = math.rsqrt %29 : vector<8x1xf32>
    %31 = vector.broadcast %20 : vector<8x1xf32> to vector<8x128xf32>
    %32 = arith.subf %16, %31 : vector<8x128xf32>
    %33 = vector.broadcast %30 : vector<8x1xf32> to vector<8x128xf32>
    %34 = arith.mulf %32, %33 : vector<8x128xf32>
    %c0_18 = arith.constant 0 : index
    %c0_19 = arith.constant 0 : index
    %35 = vector.load %arg6[%c0_18, %c0_19] : memref<1x128xf32, #tpu.memory_space<vmem>>, vector<1x128xf32>
    %36 = vector.broadcast %35 : vector<1x128xf32> to vector<8x128xf32>
    %37 = arith.mulf %34, %36 : vector<8x128xf32>
    %c0_20 = arith.constant 0 : index
    %c0_21 = arith.constant 0 : index
    %38 = vector.load %arg7[%c0_20, %c0_21] : memref<1x128xf32, #tpu.memory_space<vmem>>, vector<1x128xf32>
    %39 = vector.broadcast %38 : vector<1x128xf32> to vector<8x128xf32>
    %40 = arith.addf %37, %39 : vector<8x128xf32>
    %c0_22 = arith.constant 0 : index
    %c0_23 = arith.constant 0 : index
    %41 = vector.load %arg8[%c0_22, %c0_23] : memref<8x128xf32, #tpu.memory_space<vmem>>, vector<8x128xf32>
    tpu.vector_store %arg8[%c0_22, %c0_23], %40 {strides = array<i32>} : memref<8x128xf32, #tpu.memory_space<vmem>>, vector<8x128xf32>,
    return
  }
  func.func @transform_0(%arg0: i32) -> (i32, i32) {
    %c0_i32 = arith.constant 0 : i32
    %c0_i32_0 = arith.constant 0 : i32
    return %arg0, %c0_i32 : i32, i32
  }
  func.func @transform_1(%arg0: i32) -> (i32, i32) {
    %c0_i32 = arith.constant 0 : i32
    %c0_i32_0 = arith.constant 0 : i32
    %c0_i32_1 = arith.constant 0 : i32
    return %c0_i32, %c0_i32_0 : i32, i32
  }
  func.func @transform_2(%arg0: i32) -> (i32, i32) {
    %c0_i32 = arith.constant 0 : i32
    %c0_i32_0 = arith.constant 0 : i32
    %c0_i32_1 = arith.constant 0 : i32
    return %c0_i32, %c0_i32_0 : i32, i32
  }
  func.func @transform_3(%arg0: i32) -> (i32, i32) {
    %c0_i32 = arith.constant 0 : i32
    %c0_i32_0 = arith.constant 0 : i32
    %c0_i32_1 = arith.constant 0 : i32
    return %c0_i32, %c0_i32_0 : i32, i32
  }
  func.func @transform_4(%arg0: i32) -> (i32, i32) {
    %c0_i32 = arith.constant 0 : i32
    %c0_i32_0 = arith.constant 0 : i32
    %c0_i32_1 = arith.constant 0 : i32
    return %c0_i32, %c0_i32_0 : i32, i32
  }
  func.func @transform_5(%arg0: i32) -> (i32, i32) {
    %c0_i32 = arith.constant 0 : i32
    %c0_i32_0 = arith.constant 0 : i32
    %c0_i32_1 = arith.constant 0 : i32
    return %c0_i32, %c0_i32_0 : i32, i32
  }
  func.func @transform_6(%arg0: i32) -> (i32, i32) {
    %c0_i32 = arith.constant 0 : i32
    %c0_i32_0 = arith.constant 0 : i32
    %c0_i32_1 = arith.constant 0 : i32
    return %c0_i32, %c0_i32_0 : i32, i32
  }
  func.func @transform_7(%arg0: i32) -> (i32, i32) {
    %c0_i32 = arith.constant 0 : i32
    %c0_i32_0 = arith.constant 0 : i32
    return %arg0, %c0_i32 : i32, i32
  }
}

</mosaic_0001>

<bundles_post_ra>
// kernel: tpu_custom_call.1
= control target key start
LH: loop header
LB: loop body
LE: loop exit
PB: predicated region body
PF: predicated region fallthrough
CT: control target
= control target key end

     0   :  { %s1175_s0 = inlined_call_operand.hbm [shape: f32[16,128], index: 0, kind: input, shape index: {}]   ;;  %s1176_s1 = inlined_call_operand.hbm [shape: bf16[128,128], index: 1, kind: input, shape index: {}]   ;;  %s1177_s2 = inlined_call_operand.vmem [shape: f32[1,128], index: 2, kind: input, shape index: {}]   ;;  %s1178_s3 = inlined_call_operand.hbm [shape: bf16[128,128], index: 3, kind: input, shape index: {}]   ;;  %s1179_s4 = inlined_call_operand.vmem [shape: f32[1,128], index: 4, kind: input, shape index: {}]   ;;  %s1180_s5 = inlined_call_operand.vmem [shape: f32[1,128], index: 5, kind: input, shape index: {}]   ;;  %s1181_s6 = inlined_call_operand.vmem [shape: f32[1,128], index: 6, kind: input, shape index: {}]   ;;  %s1182_s7 = inlined_call_operand.hbm [shape: f32[16,128], index: 7, kind: output, shape index: {}]  }
   0x1   :  { %1183 = sst [smem:[#allocation12_spill]] %s1176_s1 }
   0x2   :  { %1184 = sst [smem:[#allocation13_spill]] %s1178_s3 }
   0x3   :  { %12 = vsyncpa [#allocation3], 0 }
   0x4   :  { %14 = vsyncpa [#allocation3 + $0x1], 0 }
   0x5   :  { %15 = vsyncpa [#allocation6], 0 }
   0x6   :  { %16 = vsyncpa [#allocation4], 0 }
   0x7   :  { %18 = vsyncpa [#allocation4 + $0x1], 0  ;;  %s1011_s24 = smov 0   ;;  %s1013_s25 = smov 0  }
   0x8   :  { %s1015_s26 = smov 0   ;;  %s1017_s27 = smov 0  }
   0x9 LB: > { %s1185_s1 = sld [smem:[#allocation12_spill]]  ;;  %s1035_s8 = sadd.s32 4294967295, %s965_s27   ;;  %s965_s27 = sphi %s1017_s27, %s1197_s27   ;;  %s961_s26 = sphi %s1015_s26, %s1196_s26   ;;  %s957_s25 = sphi %s1013_s25, %s1195_s25   ;;  %s953_s24 = sphi %s1011_s24, %s1194_s24  }
   0xa   : > { %p635_p0 = scmp.ge.s32.totalorder %s965_s27, 1  ;;  %p45_p1 = scmp.eq.s32.totalorder %s1035_s8, 0 }
   0xb   : > { %p207_p2 = scmp.lt.s32.totalorder %s965_s27, 3  ;;  %s967_s10 = smov [#allocation5]  }
   0xc   : > { %s220_s11 = sshll.u32 %s967_s10, 4  ;;  %s1187_s3 = sld [smem:[#allocation13_spill]]  ;;  %s221_s11 = int_to_ptr.vmem [resolvable:$true] %s220_s11 }
   0xd   : > { %p1040_p3 = pnand %p635_p0, %p207_p2  ;;  %s968_s15 = smov [#allocation7]  }
   0xe   : > { %s237_s16 = sshll.u32 %s968_s15, 4  ;;  %s969_s17 = smov 64   ;;  %s238_s16 = int_to_ptr.vmem [resolvable:$true] %s237_s16 }
   0xf   : > { %s218_s30 = sshll.u32 %s1185_s1, 4  ;;  %p742_p4 = pneg %p1040_p3  ;;  %s219_s30 = int_to_ptr.hbm [resolvable:$true] %s218_s30 }
  0x10   : > { %s970_s18 = smov 4   ;;  %s634_s19 = sadd.s32 4294967294, %s965_s27  }
  0x11   : > { %p743_p6 = pnand %p742_p4, %p45_p1  ;;  %s1054_s20 = sadd.s32 1, %s965_s27  }
  0x12   : > { %s235_s14 = sshll.u32 %s1187_s3, 4  ;;  %s28_s21 = ssub.s32 %s965_s27, %s1054_s20  ;;  %s236_s14 = int_to_ptr.hbm [resolvable:$true] %s235_s14 }
  0x13   : > { %745 = dma.hbm_to_vmem [thread:$0]  (!%p743_p6), %s219_s30, 1024, %s221_s11, [#allocation6], %s969_s17, %s969_s17, %s970_s18  }
  0x14   : > { %748 = dma.hbm_to_vmem [thread:$0]  (!%p743_p6), %s236_s14, 1024, %s238_s16, [#allocation6], %s969_s17, %s969_s17, %s970_s18  }
  0x15   : > { %s31_s22 = sadd.s32 1, %s961_s26  ;;  %p29_p7 = scmp.eq.s32.totalorder %s28_s21, 0 }
  0x16   : > { %p38_p8 = scmp.ne.s32.totalorder %s961_s26, %s957_s25  ;;  %p39_p9 = scmp.eq.s32.totalorder %s965_s27, 0 }
  0x17   : > { %p44_p10 = scmp.ne.s32.totalorder %s957_s25, %s953_s24  ;;  %p194_p13 = scmp.eq.s32.totalorder %s1035_s8, 1 }
  0x18   : > { %s1065_s23 = scalar_select %p29_p7, %s961_s26, %s31_s22  }
  0x19   : > { %p1067_p11 = por %p39_p9, %p38_p8  ;;  %p1073_p12 = por %p45_p1, %p44_p10 }
  0x1a   : > { %p200_p0 = scmp.eq.s32.totalorder %s634_s19, 1  ;;  %p759_p2 = scmp.lt.s32.totalorder %s965_s27, 2 }
  0x1b   : > { %s260_s30 = sand.u32 1, %s961_s26   ;;  %p1080_p4 = por %p194_p13, %p38_p8 }
  0x1c   : > { %p1084_p6 = por %p200_p0, %p44_p10  ;;  %s639_s12 = sshll.u32 %s260_s30, 3 }
  0x1d   : > { %s640_s13 = sshll.u32 %s965_s27, 3  ;;  %s264_s17 = scalar_lea.vmem [#allocation2], %s639_s12 }
  0x1e   : > { %s268_s16 = scalar_lea.hbm %s1175_s0, %s640_s13  ;;  %s272_s18 = sshll.u32 %s264_s17, 4  ;;  %s273_s18 = int_to_ptr.vmem [resolvable:$true] %s272_s18 }
  0x1f   : > { %s270_s21 = sshll.u32 %s268_s16, 4  ;;  %p1094_p7 = pnand %p759_p2, %p1067_p11  ;;  %s271_s21 = int_to_ptr.hbm [resolvable:$true] %s270_s21 }
  0x20   : > { %s261_s22 = scalar_lea.sflag [#allocation3], %s260_s30  ;;  %s865_s1 = sshra.s32 %s271_s21, 4  ;;  %s866_s1 = int_to_ptr.hbm [resolvable:$true] %s865_s1 }
  0x21   : > { %s867_s3 = scalar_lea.hbm %s866_s1, 8  ;;  %p869_p9 = pneg %p1094_p7 }
  0x22   : > { %p868_p8 = scmp.ne.s32.totalorder %s866_s1, %s867_s3  ;;  %s872_s14 = scalar_lea.hbm %s1175_s0, 16 }
  0x23   : > { %p873_p11 = scmp.lt.s32.totalorder %s866_s1, %s1175_s0  ;;  %p874_p0 = scmp.lt.s32.totalorder %s872_s14, %s867_s3 }
  0x24   : > { %p870_p10 = pnand %p869_p9, %p868_p8 }
  0x25   : > { %p875_p2 = por %p874_p0, %p873_p11 }
  0x26   : > { %p871_p13 = pneg %p870_p10 }
  0x28   : > { %p876_p5 = pnand %p875_p2, %p871_p13 }
  0x2a   : > { %879 = shalt.err (!%p876_p5)
}
  0x2b   : > { %752 = dma.hbm_to_vmem [thread:$0]  (!%p1094_p7), %s271_s21, 128, %s273_s18, %s261_s22  }
  0x2c   : > { %281 = sbr.rel (%p1040_p3) target bundleno = 503 (0x1f7), region = 48  ;;  %s1111_s30 = sand.u32 (!%p1040_p3), 1, %s957_s25  }
  0x2d   : > { %s642_s16 = sshll.u32 (!%p1040_p3), %s1111_s30, 3  ;;  %s284_s17 = scalar_lea.sflag (!%p1040_p3), [#allocation3], %s1111_s30 }
  0x2e   : > { %s1117_s1 = scalar_lea.vmem (!%p1040_p3), [#allocation2], %s642_s16 }
  0x31   : > { %940 = dma.done.wait (%p1073_p12), %s284_s17, 128  }
  0x32   : > { %942 = vsyncadd (%p1073_p12), %s284_s17, 4294967168 }
  0x33   : > { %944 = dma.done.wait (%p45_p1), [#allocation6], 2048  }
  0x34   : > { %946 = vsyncadd (%p45_p1), [#allocation6], 4294965248  ;;  %v721_v0 = vld [vmem:[#allocation5 + $0x38] sm:$0xff]  ;;  %v720_v1 = vld [vmem:[#allocation5 + $0x30] sm:$0xff]  ;;  %s711_s21 = sshll.u32 %s1035_s8, 3  ;;  %s328_s8 = scalar_lea.vmem [#allocation8], %s642_s16 }
  0x35   : > { %399 = vmatpush.bf16.msra.mxu0 %v721_v0  ;;  %v729_v2 = vld [vmem:[#allocation7 + $0x38] sm:$0xff]  ;;  %v728_v3 = vld [vmem:[#allocation7 + $0x30] sm:$0xff]  ;;  %v719_v4 = vld [vmem:[#allocation5 + $0x28] sm:$0xff]  ;;  %s540_s14 = scalar_lea.hbm %s1182_s7, %s711_s21  ;;  %s542_s17 = sshll.u32 %s328_s8, 4  ;;  %s543_s17 = int_to_ptr.vmem [resolvable:$true] %s542_s17 }
  0x36   : > { %482 = vmatpush.bf16.msra.mxu1 %v729_v2  ;;  %v727_v5 = vld [vmem:[#allocation7 + $0x28] sm:$0xff]  ;;  %v718_v6 = vld [vmem:[#allocation5 + $0x20] sm:$0xff]  ;;  %v717_v8 = vld [vmem:[#allocation5 + $0x18] sm:$0xff]  ;;  %s530_s3 = scalar_lea.sflag [#allocation4], %s1111_s30  ;;  %s915_s19 = scalar_lea.hbm %s1182_s7, 16 }
  0x37   : > { %v726_v7 = vld [vmem:[#allocation7 + $0x20] sm:$0xff]  ;;  %v725_v9 = vld [vmem:[#allocation7 + $0x18] sm:$0xff]  ;;  %v716_v10 = vld [vmem:[#allocation5 + $0x10] sm:$0xff] }
  0x38   : > { %v724_v11 = vld [vmem:[#allocation7 + $0x10] sm:$0xff]  ;;  %v715_v12 = vld [vmem:[#allocation5 + $0x8] sm:$0xff]  ;;  %v714_v13 = vld [vmem:[#allocation5] sm:$0xff] }
  0x39   : > { %400 = vmatpush.bf16.msra.mxu0 %v720_v1  ;;  %v329_v14 = vld [vmem:[%s1117_s1] sm:$0xff]  ;;  %v723_v16 = vld [vmem:[#allocation7 + $0x8] sm:$0xff]  ;;  %v722_v17 = vld [vmem:[#allocation7] sm:$0xff]  ;;  %s544_s1 = sshll.u32 %s540_s14, 4  ;;  %s545_s1 = int_to_ptr.hbm [resolvable:$true] %s544_s1 }
  0x3a   : > { %483 = vmatpush.bf16.msra.mxu1 %v728_v3  ;;  %v330_v15 = vpack.c.bf16 %v329_v14, %v329_v14  ;;  %v799_v18 = vld [vmem:[%s1177_s2] ss:$0 sm:$0xff]  ;;  %s909_s9 = sshra.s32 %s545_s1, 4  ;;  %s910_s9 = int_to_ptr.hbm [resolvable:$true] %s909_s9 }
  0x3b   : > { %v800_v24 = vld [vmem:[%s1179_s4] ss:$0 sm:$0xff]  ;;  %s911_s29 = scalar_lea.hbm %s910_s9, 8  ;;  %p916_p12 = scmp.lt.s32.totalorder %s910_s9, %s1182_s7 }
  0x3c   : > { %v801_v44 = vld [vmem:[%s1180_s5] ss:$0 sm:$0xff]  ;;  %p912_p1 = scmp.ne.s32.totalorder %s910_s9, %s911_s29  ;;  %p917_p7 = scmp.lt.s32.totalorder %s915_s19, %s911_s29 }
  0x3d   : > { %401 = vmatpush.bf16.msra.mxu0 %v719_v4  ;;  %v802_v47 = vld [vmem:[%s1181_s6] ss:$0 sm:$0xff] }
  0x3e   : > { %484 = vmatpush.bf16.msra.mxu1 %v727_v5  ;;  %p913_p3 = pnand %p912_p1, %p1080_p4  ;;  %p918_p8 = por %p917_p7, %p916_p12 }
  0x40   : > { %p914_p5 = pneg %p913_p3 }
  0x41   : > { %402 = vmatpush.bf16.msra.mxu0 %v718_v6 }
  0x42   : > { %485 = vmatpush.bf16.msra.mxu1 %v726_v7  ;;  %p919_p9 = pnand %p918_p8, %p914_p5 }
  0x45   : > { %403 = vmatpush.bf16.msra.mxu0 %v717_v8 }
  0x46   : > { %486 = vmatpush.bf16.msra.mxu1 %v725_v9 }
  0x49   : > { %404 = vmatpush.bf16.msra.mxu0 %v716_v10 }
  0x4a   : > { %487 = vmatpush.bf16.msra.mxu1 %v724_v11 }
  0x4d   : > { %405 = vmatpush.bf16.msra.mxu0 %v715_v12 }
  0x4e   : > { %488 = vmatpush.bf16.msra.mxu1 %v723_v16 }
  0x51   : > { %406 = vmatpush.bf16.msra.mxu0 %v714_v13 }
  0x52   : > { %489 = vmatpush.bf16.msra.mxu1 %v722_v17 }
  0x54   : > { %407 = vmatmul.bf16.vlgmr.msra.gmra.mxu0 %v330_v15 }
  0xd1   : > { %v408_v19 = vpop.f32.mrf.mxu0 }
  0xd2   : > { %v409_v20 = vadd.f32 %v799_v18, %v408_v19 }
  0xd4   : > { %v412_v21 = vmax.f32 %v409_v20, 0.0 }
  0xd6   : > { %v413_v22 = vpack.c.bf16 %v412_v21, %v412_v21 }
  0xd8   : > { %490 = vmatmul.bf16.vlgmr.msra.gmra.mxu1 %v413_v22 }
  0xd9   : > { %v410_v23 = vpop.f32.mrf.mxu0 }
 0x155   : > { %v491_v25 = vpop.f32.mrf.mxu1 }
 0x156   : > { %v492_v26 = vadd.f32 %v800_v24, %v491_v25 }
 0x158   : > { %v495_v27 = vadd.f32 %v492_v26, %v329_v14 }
 0x15a   : > { %496 = vadd.xlane.f32.xlu0 %v495_v27  ;;  %v499_v29 = vmul.f32 %v495_v27, %v495_v27 }
 0x15d   : > { %v493_v28 = vpop.f32.mrf.mxu1 }
 0x162   : > { %500 = vadd.xlane.f32.xlu0 %v499_v29 }
 0x1cd   : > { %v497_v30 = vpop.xlane.xlu0 %496 }
 0x1ce   : > { %v498_v31 = vmul.f32 0.0078125, %v497_v30 }
 0x1d0   : > { %v503_v33 = vmul.f32 %v498_v31, %v498_v31  ;;  %v516_v43 = vsub.f32 %v495_v27, %v498_v31 }
 0x1d5   : > { %v501_v32 = vpop.xlane.xlu0 %500 }
 0x1d6   : > { %v502_v34 = vmul.f32 0.0078125, %v501_v32 }
 0x1d8   : > { %v504_v35 = vsub.f32 %v502_v34, %v503_v33 }
 0x1da   : > { %v505_v36 = vadd.f32 1e-05, %v504_v35 }
 0x1dc   : > { %803 = vrsqrt.f32 %v505_v36  ;;  %vm512_vm1 = vweird.f32 %v505_v36 }
 0x1e2   : > { %v804_v37 = vpop.eup %803 }
 0x1e3   : > { %v507_v38 = vmul.f32 %v804_v37, %v505_v36  ;;  %vm513_vm0 = vweird.f32 %v804_v37 }
 0x1e4   : > { %vm514_vm2 = vmor %vm512_vm1, %vm513_vm0 }
 0x1e5   : > { %v508_v39 = vmul.f32 %v804_v37, %v507_v38 }
 0x1e7   : > { %v509_v40 = vmul.f32 0.5, %v508_v39 }
 0x1e9   : > { %v510_v41 = vsub.f32 1.5, %v509_v40 }
 0x1eb   : > { %v511_v42 = vmul.f32 %v804_v37, %v510_v41 }
 0x1ed   : > { %v515_v45 = vsel %vm514_vm2, %v804_v37, %v511_v42 }
 0x1ee   : > { %v517_v46 = vmul.f32 %v516_v43, %v515_v45 }
 0x1f0   : > { %v522_v48 = vmul.f32 %v801_v44, %v517_v46 }
 0x1f2   : > { %v527_v49 = vadd.f32 %v802_v47, %v522_v48 }
 0x1f4   : > { %528 = vst [vmem:[%s328_s8] sm:$0xff] %v527_v49 }
 0x1f5   : > { %922 = shalt.err (!%p919_p9)
}
 0x1f6   : > { %740 = dma.vmem_to_hbm [thread:$0]  (%p1080_p4), %s543_s17, 128, %s545_s1, %s530_s3  }
 0x1f7 PF: > { %s556_s30 = sand.u32 1, %s953_s24   ;;  %p1193_p10 = scmp.ge.s32.totalorder %s965_s27, 2 }
 0x1f8   : > { %s557_s12 = scalar_lea.sflag [#allocation4], %s556_s30 }
 0x1f9   : > { %p754_p13 = pnand %p1193_p10, %p1084_p6 }
 0x1fb   : > { %p755_p11 = pneg %p754_p13 }
 0x1fd   : > { %948 = dma.done.wait (%p755_p11), %s557_s12, 128  }
 0x1fe   : > { %950 = vsyncadd (%p755_p11), %s557_s12, 4294967168  ;;  %p21_p0 = scmp.ge.s32.totalorder %s1054_s20, 4   ;;  %s1194_s24 = smov %s957_s25 }
 0x1ff   : > { %s1195_s25 = smov %s961_s26  ;;  %s1196_s26 = smov %s1065_s23 }
 0x200   : > { %s1197_s27 = smov %s1054_s20  ;;  %23 = sbr.rel (!%p21_p0) target bundleno = 9 (0x9), region = 101 }
 0x205   :  { %563 = vsyncpa [#allocation3], 1 }
 0x206   :  { %565 = vsyncpa [#allocation3 + $0x1], 1 }
 0x207   :  { %566 = vsyncpa [#allocation6], 1 }
 0x208   :  { %567 = vsyncpa [#allocation4], 1 }
 0x209   :  { %569 = vsyncpa [#allocation4 + $0x1], 1 }

// kernel: tpu_custom_call.1
= control target key start
LH: loop header
LB: loop body
LE: loop exit
PB: predicated region body
PF: predicated region fallthrough
CT: control target
= control target key end

     0   :  { %s1175_s0 = inlined_call_operand.hbm [shape: f32[16,128], index: 0, kind: input, shape index: {}]   ;;  %s1176_s1 = inlined_call_operand.hbm [shape: bf16[128,128], index: 1, kind: input, shape index: {}]   ;;  %s1177_s2 = inlined_call_operand.vmem [shape: f32[1,128], index: 2, kind: input, shape index: {}]   ;;  %s1178_s3 = inlined_call_operand.hbm [shape: bf16[128,128], index: 3, kind: input, shape index: {}]   ;;  %s1179_s4 = inlined_call_operand.vmem [shape: f32[1,128], index: 4, kind: input, shape index: {}]   ;;  %s1180_s5 = inlined_call_operand.vmem [shape: f32[1,128], index: 5, kind: input, shape index: {}]   ;;  %s1181_s6 = inlined_call_operand.vmem [shape: f32[1,128], index: 6, kind: input, shape index: {}]   ;;  %s1182_s7 = inlined_call_operand.hbm [shape: f32[16,128], index: 7, kind: output, shape index: {}]  }
   0x1   :  { %1183 = sst [smem:[#allocation12_spill]] %s1176_s1 }
   0x2   :  { %1184 = sst [smem:[#allocation13_spill]] %s1178_s3 }
   0x3   :  { %12 = vsyncpa [#allocation3], 0 }
   0x4   :  { %14 = vsyncpa [#allocation3 + $0x1], 0 }
   0x5   :  { %15 = vsyncpa [#allocation6], 0 }
   0x6   :  { %16 = vsyncpa [#allocation4], 0 }
   0x7   :  { %18 = vsyncpa [#allocation4 + $0x1], 0  ;;  %s1011_s24 = smov 0   ;;  %s1013_s25 = smov 0  }
   0x8   :  { %s1015_s26 = smov 0   ;;  %s1017_s27 = smov 0  }
   0x9 LB: > { %s1185_s1 = sld [smem:[#allocation12_spill]]  ;;  %s1035_s8 = sadd.s32 4294967295, %s965_s27   ;;  %s965_s27 = sphi %s1017_s27, %s1197_s27   ;;  %s961_s26 = sphi %s1015_s26, %s1196_s26   ;;  %s957_s25 = sphi %s1013_s25, %s1195_s25   ;;  %s953_s24 = sphi %s1011_s24, %s1194_s24  }
   0xa   : > { %p635_p0 = scmp.ge.s32.totalorder %s965_s27, 1  ;;  %p45_p1 = scmp.eq.s32.totalorder %s1035_s8, 0 }
   0xb   : > { %p207_p2 = scmp.lt.s32.totalorder %s965_s27, 3  ;;  %s967_s10 = smov [#allocation5]  }
   0xc   : > { %s220_s11 = sshll.u32 %s967_s10, 4  ;;  %s1187_s3 = sld [smem:[#allocation13_spill]]  ;;  %s221_s11 = int_to_ptr.vmem [resolvable:$true] %s220_s11 }
   0xd   : > { %p1040_p3 = pnand %p635_p0, %p207_p2  ;;  %s968_s15 = smov [#allocation7]  }
   0xe   : > { %s237_s16 = sshll.u32 %s968_s15, 4  ;;  %s969_s17 = smov 64   ;;  %s238_s16 = int_to_ptr.vmem [resolvable:$true] %s237_s16 }
   0xf   : > { %s218_s30 = sshll.u32 %s1185_s1, 4  ;;  %p742_p4 = pneg %p1040_p3  ;;  %s219_s30 = int_to_ptr.hbm [resolvable:$true] %s218_s30 }
  0x10   : > { %s970_s18 = smov 4   ;;  %s634_s19 = sadd.s32 4294967294, %s965_s27  }
  0x11   : > { %p743_p6 = pnand %p742_p4, %p45_p1  ;;  %s1054_s20 = sadd.s32 1, %s965_s27  }
  0x12   : > { %s235_s14 = sshll.u32 %s1187_s3, 4  ;;  %s28_s21 = ssub.s32 %s965_s27, %s1054_s20  ;;  %s236_s14 = int_to_ptr.hbm [resolvable:$true] %s235_s14 }
  0x13   : > { %745 = dma.hbm_to_vmem [thread:$0]  (!%p743_p6), %s219_s30, 1024, %s221_s11, [#allocation6], %s969_s17, %s969_s17, %s970_s18  }
  0x14   : > { %748 = dma.hbm_to_vmem [thread:$0]  (!%p743_p6), %s236_s14, 1024, %s238_s16, [#allocation6], %s969_s17, %s969_s17, %s970_s18  }
  0x15   : > { %s31_s22 = sadd.s32 1, %s961_s26  ;;  %p29_p7 = scmp.eq.s32.totalorder %s28_s21, 0 }
  0x16   : > { %p38_p8 = scmp.ne.s32.totalorder %s961_s26, %s957_s25  ;;  %p39_p9 = scmp.eq.s32.totalorder %s965_s27, 0 }
  0x17   : > { %p44_p10 = scmp.ne.s32.totalorder %s957_s25, %s953_s24  ;;  %p194_p13 = scmp.eq.s32.totalorder %s1035_s8, 1 }
  0x18   : > { %s1065_s23 = scalar_select %p29_p7, %s961_s26, %s31_s22  }
  0x19   : > { %p1067_p11 = por %p39_p9, %p38_p8  ;;  %p1073_p12 = por %p45_p1, %p44_p10 }
  0x1a   : > { %p200_p0 = scmp.eq.s32.totalorder %s634_s19, 1  ;;  %p759_p2 = scmp.lt.s32.totalorder %s965_s27, 2 }
  0x1b   : > { %s260_s30 = sand.u32 1, %s961_s26   ;;  %p1080_p4 = por %p194_p13, %p38_p8 }
  0x1c   : > { %p1084_p6 = por %p200_p0, %p44_p10  ;;  %s639_s12 = sshll.u32 %s260_s30, 3 }
  0x1d   : > { %s640_s13 = sshll.u32 %s965_s27, 3  ;;  %s264_s17 = scalar_lea.vmem [#allocation2], %s639_s12 }
  0x1e   : > { %s268_s16 = scalar_lea.hbm %s1175_s0, %s640_s13  ;;  %s272_s18 = sshll.u32 %s264_s17, 4  ;;  %s273_s18 = int_to_ptr.vmem [resolvable:$true] %s272_s18 }
  0x1f   : > { %s270_s21 = sshll.u32 %s268_s16, 4  ;;  %p1094_p7 = pnand %p759_p2, %p1067_p11  ;;  %s271_s21 = int_to_ptr.hbm [resolvable:$true] %s270_s21 }
  0x20   : > { %s261_s22 = scalar_lea.sflag [#allocation3], %s260_s30  ;;  %s865_s1 = sshra.s32 %s271_s21, 4  ;;  %s866_s1 = int_to_ptr.hbm [resolvable:$true] %s865_s1 }
  0x21   : > { %s867_s3 = scalar_lea.hbm %s866_s1, 8  ;;  %p869_p9 = pneg %p1094_p7 }
  0x22   : > { %p868_p8 = scmp.ne.s32.totalorder %s866_s1, %s867_s3  ;;  %s872_s14 = scalar_lea.hbm %s1175_s0, 16 }
  0x23   : > { %p873_p11 = scmp.lt.s32.totalorder %s866_s1, %s1175_s0  ;;  %p874_p0 = scmp.lt.s32.totalorder %s872_s14, %s867_s3 }
  0x24   : > { %p870_p10 = pnand %p869_p9, %p868_p8 }
  0x25   : > { %p875_p2 = por %p874_p0, %p873_p11 }
  0x26   : > { %p871_p13 = pneg %p870_p10 }
  0x28   : > { %p876_p5 = pnand %p875_p2, %p871_p13 }
  0x2a   : > { %879 = shalt.err (!%p876_p5)
}
  0x2b   : > { %752 = dma.hbm_to_vmem [thread:$0]  (!%p1094_p7), %s271_s21, 128, %s273_s18, %s261_s22  }
  0x2c   : > { %281 = sbr.rel (%p1040_p3) target bundleno = 503 (0x1f7), region = 48  ;;  %s1111_s30 = sand.u32 (!%p1040_p3), 1, %s957_s25  }
  0x2d   : > { %s642_s16 = sshll.u32 (!%p1040_p3), %s1111_s30, 3  ;;  %s284_s17 = scalar_lea.sflag (!%p1040_p3), [#allocation3], %s1111_s30 }
  0x2e   : > { %s1117_s1 = scalar_lea.vmem (!%p1040_p3), [#allocation2], %s642_s16 }
  0x31   : > { %940 = dma.done.wait (%p1073_p12), %s284_s17, 128  }
  0x32   : > { %942 = vsyncadd (%p1073_p12), %s284_s17, 4294967168 }
  0x33   : > { %944 = dma.done.wait (%p45_p1), [#allocation6], 2048  }
  0x34   : > { %946 = vsyncadd (%p45_p1), [#allocation6], 4294965248  ;;  %v721_v0 = vld [vmem:[#allocation5 + $0x38] sm:$0xff]  ;;  %v720_v1 = vld [vmem:[#allocation5 + $0x30] sm:$0xff]  ;;  %s711_s21 = sshll.u32 %s1035_s8, 3  ;;  %s328_s8 = scalar_lea.vmem [#allocation8], %s642_s16 }
  0x35   : > { %399 = vmatpush.bf16.msra.mxu0 %v721_v0  ;;  %v729_v2 = vld [vmem:[#allocation7 + $0x38] sm:$0xff]  ;;  %v728_v3 = vld [vmem:[#allocation7 + $0x30] sm:$0xff]  ;;  %v719_v4 = vld [vmem:[#allocation5 + $0x28] sm:$0xff]  ;;  %s540_s14 = scalar_lea.hbm %s1182_s7, %s711_s21  ;;  %s542_s17 = sshll.u32 %s328_s8, 4  ;;  %s543_s17 = int_to_ptr.vmem [resolvable:$true] %s542_s17 }
  0x36   : > { %482 = vmatpush.bf16.msra.mxu1 %v729_v2  ;;  %v727_v5 = vld [vmem:[#allocation7 + $0x28] sm:$0xff]  ;;  %v718_v6 = vld [vmem:[#allocation5 + $0x20] sm:$0xff]  ;;  %v717_v8 = vld [vmem:[#allocation5 + $0x18] sm:$0xff]  ;;  %s530_s3 = scalar_lea.sflag [#allocation4], %s1111_s30  ;;  %s915_s19 = scalar_lea.hbm %s1182_s7, 16 }
  0x37   : > { %v726_v7 = vld [vmem:[#allocation7 + $0x20] sm:$0xff]  ;;  %v725_v9 = vld [vmem:[#allocation7 + $0x18] sm:$0xff]  ;;  %v716_v10 = vld [vmem:[#allocation5 + $0x10] sm:$0xff] }
  0x38   : > { %v724_v11 = vld [vmem:[#allocation7 + $0x10] sm:$0xff]  ;;  %v715_v12 = vld [vmem:[#allocation5 + $0x8] sm:$0xff]  ;;  %v714_v13 = vld [vmem:[#allocation5] sm:$0xff] }
  0x39   : > { %400 = vmatpush.bf16.msra.mxu0 %v720_v1  ;;  %v329_v14 = vld [vmem:[%s1117_s1] sm:$0xff]  ;;  %v723_v16 = vld [vmem:[#allocation7 + $0x8] sm:$0xff]  ;;  %v722_v17 = vld [vmem:[#allocation7] sm:$0xff]  ;;  %s544_s1 = sshll.u32 %s540_s14, 4  ;;  %s545_s1 = int_to_ptr.hbm [resolvable:$true] %s544_s1 }
  0x3a   : > { %483 = vmatpush.bf16.msra.mxu1 %v728_v3  ;;  %v330_v15 = vpack.c.bf16 %v329_v14, %v329_v14  ;;  %v799_v18 = vld [vmem:[%s1177_s2] ss:$0 sm:$0xff]  ;;  %s909_s9 = sshra.s32 %s545_s1, 4  ;;  %s910_s9 = int_to_ptr.hbm [resolvable:$true] %s909_s9 }
  0x3b   : > { %v800_v24 = vld [vmem:[%s1179_s4] ss:$0 sm:$0xff]  ;;  %s911_s29 = scalar_lea.hbm %s910_s9, 8  ;;  %p916_p12 = scmp.lt.s32.totalorder %s910_s9, %s1182_s7 }
  0x3c   : > { %v801_v44 = vld [vmem:[%s1180_s5] ss:$0 sm:$0xff]  ;;  %p912_p1 = scmp.ne.s32.totalorder %s910_s9, %s911_s29  ;;  %p917_p7 = scmp.lt.s32.totalorder %s915_s19, %s911_s29 }
  0x3d   : > { %401 = vmatpush.bf16.msra.mxu0 %v719_v4  ;;  %v802_v47 = vld [vmem:[%s1181_s6] ss:$0 sm:$0xff] }
  0x3e   : > { %484 = vmatpush.bf16.msra.mxu1 %v727_v5  ;;  %p913_p3 = pnand %p912_p1, %p1080_p4  ;;  %p918_p8 = por %p917_p7, %p916_p12 }
  0x40   : > { %p914_p5 = pneg %p913_p3 }
  0x41   : > { %402 = vmatpush.bf16.msra.mxu0 %v718_v6 }
  0x42   : > { %485 = vmatpush.bf16.msra.mxu1 %v726_v7  ;;  %p919_p9 = pnand %p918_p8, %p914_p5 }
  0x45   : > { %403 = vmatpush.bf16.msra.mxu0 %v717_v8 }
  0x46   : > { %486 = vmatpush.bf16.msra.mxu1 %v725_v9 }
  0x49   : > { %404 = vmatpush.bf16.msra.mxu0 %v716_v10 }
  0x4a   : > { %487 = vmatpush.bf16.msra.mxu1 %v724_v11 }
  0x4d   : > { %405 = vmatpush.bf16.msra.mxu0 %v715_v12 }
  0x4e   : > { %488 = vmatpush.bf16.msra.mxu1 %v723_v16 }
  0x51   : > { %406 = vmatpush.bf16.msra.mxu0 %v714_v13 }
  0x52   : > { %489 = vmatpush.bf16.msra.mxu1 %v722_v17 }
  0x54   : > { %407 = vmatmul.bf16.vlgmr.msra.gmra.mxu0 %v330_v15 }
  0xd1   : > { %v408_v19 = vpop.f32.mrf.mxu0 }
  0xd2   : > { %v409_v20 = vadd.f32 %v799_v18, %v408_v19 }
  0xd4   : > { %v412_v21 = vmax.f32 %v409_v20, 0.0 }
  0xd6   : > { %v413_v22 = vpack.c.bf16 %v412_v21, %v412_v21 }
  0xd8   : > { %490 = vmatmul.bf16.vlgmr.msra.gmra.mxu1 %v413_v22 }
  0xd9   : > { %v410_v23 = vpop.f32.mrf.mxu0 }
 0x155   : > { %v491_v25 = vpop.f32.mrf.mxu1 }
 0x156   : > { %v492_v26 = vadd.f32 %v800_v24, %v491_v25 }
 0x158   : > { %v495_v27 = vadd.f32 %v492_v26, %v329_v14 }
 0x15a   : > { %496 = vadd.xlane.f32.xlu0 %v495_v27  ;;  %v499_v29 = vmul.f32 %v495_v27, %v495_v27 }
 0x15d   : > { %v493_v28 = vpop.f32.mrf.mxu1 }
 0x162   : > { %500 = vadd.xlane.f32.xlu0 %v499_v29 }
 0x1cd   : > { %v497_v30 = vpop.xlane.xlu0 %496 }
 0x1ce   : > { %v498_v31 = vmul.f32 0.0078125, %v497_v30 }
 0x1d0   : > { %v503_v33 = vmul.f32 %v498_v31, %v498_v31  ;;  %v516_v43 = vsub.f32 %v495_v27, %v498_v31 }
 0x1d5   : > { %v501_v32 = vpop.xlane.xlu0 %500 }
 0x1d6   : > { %v502_v34 = vmul.f32 0.0078125, %v501_v32 }
 0x1d8   : > { %v504_v35 = vsub.f32 %v502_v34, %v503_v33 }
 0x1da   : > { %v505_v36 = vadd.f32 1e-05, %v504_v35 }
 0x1dc   : > { %803 = vrsqrt.f32 %v505_v36  ;;  %vm512_vm1 = vweird.f32 %v505_v36 }
 0x1e2   : > { %v804_v37 = vpop.eup %803 }
 0x1e3   : > { %v507_v38 = vmul.f32 %v804_v37, %v505_v36  ;;  %vm513_vm0 = vweird.f32 %v804_v37 }
 0x1e4   : > { %vm514_vm2 = vmor %vm512_vm1, %vm513_vm0 }
 0x1e5   : > { %v508_v39 = vmul.f32 %v804_v37, %v507_v38 }
 0x1e7   : > { %v509_v40 = vmul.f32 0.5, %v508_v39 }
 0x1e9   : > { %v510_v41 = vsub.f32 1.5, %v509_v40 }
 0x1eb   : > { %v511_v42 = vmul.f32 %v804_v37, %v510_v41 }
 0x1ed   : > { %v515_v45 = vsel %vm514_vm2, %v804_v37, %v511_v42 }
 0x1ee   : > { %v517_v46 = vmul.f32 %v516_v43, %v515_v45 }
 0x1f0   : > { %v522_v48 = vmul.f32 %v801_v44, %v517_v46 }
 0x1f2   : > { %v527_v49 = vadd.f32 %v802_v47, %v522_v48 }
 0x1f4   : > { %528 = vst [vmem:[%s328_s8] sm:$0xff] %v527_v49 }
 0x1f5   : > { %922 = shalt.err (!%p919_p9)
}
 0x1f6   : > { %740 = dma.vmem_to_hbm [thread:$0]  (%p1080_p4), %s543_s17, 128, %s545_s1, %s530_s3  }
 0x1f7 PF: > { %s556_s30 = sand.u32 1, %s953_s24   ;;  %p1193_p10 = scmp.ge.s32.totalorder %s965_s27, 2 }
 0x1f8   : > { %s557_s12 = scalar_lea.sflag [#allocation4], %s556_s30 }
 0x1f9   : > { %p754_p13 = pnand %p1193_p10, %p1084_p6 }
 0x1fb   : > { %p755_p11 = pneg %p754_p13 }
 0x1fd   : > { %948 = dma.done.wait (%p755_p11), %s557_s12, 128  }
 0x1fe   : > { %950 = vsyncadd (%p755_p11), %s557_s12, 4294967168  ;;  %p21_p0 = scmp.ge.s32.totalorder %s1054_s20, 4   ;;  %s1194_s24 = smov %s957_s25 }
 0x1ff   : > { %s1195_s25 = smov %s961_s26  ;;  %s1196_s26 = smov %s1065_s23 }
 0x200   : > { %s1197_s27 = smov %s1054_s20  ;;  %23 = sbr.rel (!%p21_p0) target bundleno = 9 (0x9), region = 101 }
 0x205   :  { %563 = vsyncpa [#allocation3], 1 }
 0x206   :  { %565 = vsyncpa [#allocation3 + $0x1], 1 }
 0x207   :  { %566 = vsyncpa [#allocation6], 1 }
 0x208   :  { %567 = vsyncpa [#allocation4], 1 }
 0x209   :  { %569 = vsyncpa [#allocation4 + $0x1], 1 }

</bundles_post_ra>
